<compile_context>
chip_gen: v5e
topology: v5e:2x2
jax: 0.10.0
libtpu: 0.0.40
codegen_flags: <defaults>
</compile_context>

<pallas_src>
import functools

import numpy as np

import jax
import jax.numpy as jnp
from jax.experimental import pallas as pl
from jax.experimental.pallas import tpu as pltpu


# ----------------------------------------------------------------------------
# Config (small synthetic ChatGLM config)
# ----------------------------------------------------------------------------
class Cfg:
    padded_vocab_size = 128
    hidden_size = 32
    num_attention_heads = 4
    multi_query_attention = True
    multi_query_group_num = 2
    ffn_hidden_size = 64
    num_layers = 2
    layernorm_epsilon = 1e-5
    rmsnorm = True
    apply_residual_connection_post_layernorm = False
    post_layer_norm = True
    add_bias_linear = False
    add_qkv_bias = True
    rope_ratio = 1.0
    seq_length = 64

    head_dim = hidden_size // num_attention_heads            # 8
    num_kv_heads = multi_query_group_num                     # 2
    q_size = num_attention_heads * head_dim                  # 32
    kv_size = num_kv_heads * head_dim                        # 16
    qk_size = q_size + kv_size                               # 48
    qkv_out = q_size + 2 * kv_size                           # 64
    rotary_dim = head_dim // 2                               # 4
    rope_base = 10000.0 * rope_ratio
    scaling = head_dim ** -0.5


# ----------------------------------------------------------------------------
# Fused per-layer Pallas kernel
#   RMSNorm -> QKV(+bias) -> rotary -> causal GQA attention -> dense(+residual)
#   -> RMSNorm -> h_to_4h -> SiluAndMul -> 4h_to_h -> (+residual) [-> final RMSNorm]
# ----------------------------------------------------------------------------
def _glm_layer_kernel(x_ref, ln1_ref, qkv_w_ref, qkv_b_ref, cos_ref, sin_ref,
                      swap_ref, dense_w_ref, ln2_ref, w1_ref, w2_ref, *rest,
                      eps, num_heads, num_kv_heads, head_dim, scale, ffn,
                      apply_final_ln):
    if apply_final_ln:
        final_ln_ref, o_ref = rest
    else:
        (o_ref,) = rest

    x = x_ref[...].astype(jnp.float32)                       # [T, H]
    T, H = x.shape
    d = head_dim
    rep = num_heads // num_kv_heads
    q_size = num_heads * d
    qk_size = q_size + num_kv_heads * d

    def rmsnorm(v, w_ref):
        var = jnp.mean(v * v, axis=-1, keepdims=True)
        return v * jax.lax.rsqrt(var + eps) * w_ref[...].astype(jnp.float32)

    # ---------------- attention half-block ----------------
    ln1 = rmsnorm(x, ln1_ref).astype(jnp.bfloat16)
    qkv = jnp.dot(ln1, qkv_w_ref[...], preferred_element_type=jnp.float32)
    qkv = qkv + qkv_b_ref[...].astype(jnp.float32)            # [T, q + 2*kv]

    cos = cos_ref[...]                                        # [T, d] f32 (1 past rotary_dim)
    sin = sin_ref[...]                                        # [T, d] f32 (0 past rotary_dim)
    swap = swap_ref[...]                                      # [d, d] bf16 pair-swap-with-sign

    def rope(xh):                                             # xh: [T, d] f32
        # GPT-J interleaved rotary: out = x*cos + swap(x)*sin, swap is a tiny bf16 matmul.
        rot = jnp.dot(xh.astype(jnp.bfloat16), swap, preferred_element_type=jnp.float32)
        return xh * cos + rot * sin

    # Causal mask built once (diagonal always unmasked; finite bias avoids NaN rows).
    row = jax.lax.broadcasted_iota(jnp.int32, (T, T), 0)
    col = jax.lax.broadcasted_iota(jnp.int32, (T, T), 1)
    causal = col <= row

    attn_out = jnp.zeros((T, H), jnp.float32)
    for g in range(num_kv_heads):
        # shared K/V for this GQA group: rotate K once, reuse for `rep` query heads
        kg = rope(qkv[:, q_size + g * d:q_size + (g + 1) * d]).astype(jnp.bfloat16)
        vg = qkv[:, qk_size + g * d:qk_size + (g + 1) * d].astype(jnp.bfloat16)
        for r in range(rep):
            h = g * rep + r
            qh = rope(qkv[:, h * d:(h + 1) * d]).astype(jnp.bfloat16)
            # contract on last dims of both operands (no in-kernel transpose)
            s = jax.lax.dot_general(qh, kg, (((1,), (1,)), ((), ())),
                                    preferred_element_type=jnp.float32) * scale
            s = jnp.where(causal, s, -1e30)
            m = jnp.max(s, axis=-1, keepdims=True)
            p = jnp.exp(s - m)
            l = jnp.sum(p, axis=-1, keepdims=True)
            ctx = jnp.dot(p.astype(jnp.bfloat16), vg,
                          preferred_element_type=jnp.float32) / l        # [T, d]
            # fuse the dense projection per head: accumulate instead of concatenating
            attn_out = attn_out + jnp.dot(
                ctx.astype(jnp.bfloat16), dense_w_ref[h * d:(h + 1) * d, :],
                preferred_element_type=jnp.float32)
    # TODO(synk): at real sizes replace the per-head loop with flash-style (q-tile, kv-tile)
    # grid + online-softmax scratch and batch the heads of a KV group into one MXU pass.

    # residual = hidden_states (apply_residual_connection_post_layernorm = False)
    ln_input = x + attn_out

    # ---------------- MLP half-block ----------------
    ln2 = rmsnorm(ln_input, ln2_ref).astype(jnp.bfloat16)
    inter = jnp.dot(ln2, w1_ref[...], preferred_element_type=jnp.float32)   # [T, 2F]
    a = inter[:, :ffn]
    b = inter[:, ffn:]
    act = (a * jax.nn.sigmoid(a) * b).astype(jnp.bfloat16)                  # SiluAndMul
    mlp_out = jnp.dot(act, w2_ref[...], preferred_element_type=jnp.float32)
    out = ln_input + mlp_out

    if apply_final_ln:                                        # fused final RMSNorm (last layer)
        out = rmsnorm(out, final_ln_ref)

    o_ref[...] = out.astype(o_ref.dtype)


# ----------------------------------------------------------------------------
# pallas_call wrapper (one call per transformer layer)
# ----------------------------------------------------------------------------
def glm_layer(x, cos, sin, swap, p, cfg, final_ln=None):
    T, H = x.shape
    apply_final_ln = final_ln is not None
    kernel = functools.partial(
        _glm_layer_kernel,
        eps=cfg.layernorm_epsilon,
        num_heads=cfg.num_attention_heads,
        num_kv_heads=cfg.num_kv_heads,
        head_dim=cfg.head_dim,
        scale=cfg.scaling,
        ffn=cfg.ffn_hidden_size,
        apply_final_ln=apply_final_ln,
    )
    inputs = [x,
              p["input_ln"],
              p["qkv_w"],
              p["qkv_b"],
              cos, sin, swap,
              p["dense_w"],
              p["post_ln"],
              p["h_to_4h_w"],
              p["4h_to_h_w"]]
    in_specs = [
        pl.BlockSpec((T, H), lambda i: (0, 0)),
        pl.BlockSpec((1, H), lambda i: (0, 0)),
        pl.BlockSpec((H, cfg.qkv_out), lambda i: (0, 0)),
        pl.BlockSpec((1, cfg.qkv_out), lambda i: (0, 0)),
        pl.BlockSpec((T, cfg.head_dim), lambda i: (0, 0)),
        pl.BlockSpec((T, cfg.head_dim), lambda i: (0, 0)),
        pl.BlockSpec((cfg.head_dim, cfg.head_dim), lambda i: (0, 0)),
        pl.BlockSpec((cfg.q_size, H), lambda i: (0, 0)),
        pl.BlockSpec((1, H), lambda i: (0, 0)),
        pl.BlockSpec((H, 2 * cfg.ffn_hidden_size), lambda i: (0, 0)),
        pl.BlockSpec((cfg.ffn_hidden_size, H), lambda i: (0, 0)),
    ]
    if apply_final_ln:
        inputs.append(final_ln)
        in_specs.append(pl.BlockSpec((1, H), lambda i: (0, 0)))

    return pl.pallas_call(
        kernel,
        out_shape=jax.ShapeDtypeStruct((T, H), x.dtype),
        grid=(1,),
        in_specs=in_specs,
        out_specs=pl.BlockSpec((T, H), lambda i: (0, 0)),
        input_output_aliases={0: 0},      # hidden_states updated in place (same HBM buffer)
        compiler_params=pltpu.CompilerParams(dimension_semantics=("arbitrary",)),
    )(*inputs)


# ----------------------------------------------------------------------------
# JAX glue: per-head rotary cos/sin tables + tiny [d, d] pair-swap matrix
# ----------------------------------------------------------------------------
def rope_tables(position_ids, cfg):
    """Returns cos/sin of shape [T, head_dim] (1 / 0 outside the partial rotary_dim)."""
    rot, d = cfg.rotary_dim, cfg.head_dim
    inv_freq = 1.0 / (cfg.rope_base ** (jnp.arange(0, rot, 2, dtype=jnp.float32) / rot))
    freqs = position_ids.astype(jnp.float32)[:, None] * inv_freq[None, :]   # [T, rot/2]
    cos_i = jnp.repeat(jnp.cos(freqs), 2, axis=-1)                          # [T, rot]
    sin_i = jnp.repeat(jnp.sin(freqs), 2, axis=-1)
    T = position_ids.shape[0]
    cos = jnp.concatenate([cos_i, jnp.ones((T, d - rot), jnp.float32)], axis=-1)
    sin = jnp.concatenate([sin_i, jnp.zeros((T, d - rot), jnp.float32)], axis=-1)
    return cos, sin


def rope_swap_matrix(cfg):
    # per-head [d, d] matrix S with (x @ S)[2m] = -x[2m+1], (x @ S)[2m+1] = x[2m]
    # on the first rotary_dim columns; zero (pass-through via sin=0) elsewhere.
    d, rot = cfg.head_dim, cfg.rotary_dim
    s = np.zeros((d, d), np.float32)
    for m in range(rot // 2):
        s[2 * m + 1, 2 * m] = -1.0
        s[2 * m, 2 * m + 1] = 1.0
    return jnp.asarray(s, dtype=jnp.bfloat16)


# ----------------------------------------------------------------------------
# Model forward
# ----------------------------------------------------------------------------
def chatglm_model_forward(input_ids, position_ids, params, cfg):
    hidden_states = params["embedding"][input_ids]         # [T, H] gather (JAX glue)
    cos, sin = rope_tables(position_ids, cfg)               # shared across layers
    swap = rope_swap_matrix(cfg)
    n_layers = len(params["layers"])
    for li, layer_params in enumerate(params["layers"]):
        is_last = li == n_layers - 1
        final_ln = params["final_ln"] if (is_last and cfg.post_layer_norm) else None
        hidden_states = glm_layer(hidden_states, cos, sin, swap, layer_params, cfg,
                                  final_ln=final_ln)
    return hidden_states
    # TODO(synk): output_layer (ParallelLMHead) is defined in __init__ but not applied
    # in ChatGLMModel.forward, so it is intentionally unused here.


# ----------------------------------------------------------------------------
# Deterministic parameter init (weights bf16 for the MXU, norms/bias f32)
# ----------------------------------------------------------------------------
def init_params(key, cfg):
    def nrm(k, shape, scale=0.02, dtype=jnp.bfloat16):
        return (scale * jax.random.normal(k, shape, jnp.float32)).astype(dtype)

    H = cfg.hidden_size
    keys = jax.random.split(key, 2 + cfg.num_layers)
    params = {
        "embedding": nrm(keys[0], (cfg.padded_vocab_size, H)),
        "final_ln": jnp.ones((1, H), jnp.float32),
        "layers": [],
    }
    for li in range(cfg.num_layers):
        lk = jax.random.split(keys[2 + li], 5)
        params["layers"].append({
            "input_ln": jnp.ones((1, H), jnp.float32),
            "post_ln": jnp.ones((1, H), jnp.float32),
            "qkv_w": nrm(lk[0], (H, cfg.qkv_out)),
            "qkv_b": nrm(lk[1], (1, cfg.qkv_out), dtype=jnp.float32),  # add_qkv_bias=True
            "dense_w": nrm(lk[2], (cfg.q_size, H)),
            "h_to_4h_w": nrm(lk[3], (H, 2 * cfg.ffn_hidden_size)),
            "4h_to_h_w": nrm(lk[4], (cfg.ffn_hidden_size, H)),
        })
    return params


# ----------------------------------------------------------------------------
# Main
# ----------------------------------------------------------------------------
if __name__ == "__main__":
    cfg = Cfg()
    key = jax.random.PRNGKey(0)
    k_param, k_ids = jax.random.split(key)

    T = 8  # number of tokens (single-sequence prefill)
    params = init_params(k_param, cfg)
    input_ids = jax.random.randint(k_ids, (T,), 0, cfg.padded_vocab_size,
                                   dtype=jnp.int32)
    position_ids = jnp.arange(T, dtype=jnp.int32)

    out = chatglm_model_forward(input_ids, position_ids, params, cfg)
    out = jax.block_until_ready(out)

    assert out.shape == (T, cfg.hidden_size)
    assert bool(jnp.all(jnp.isfinite(out.astype(jnp.float32))))
    print("KERNEL_OK")
</pallas_src>

<mosaic_0001>
module attributes {stable_mosaic.version = 11 : i64} {
  func.func @_glm_layer_kernel(%arg0: i32, %arg1: memref<8x32xbf16, #tpu.memory_space<vmem>>, %arg2: memref<1x32xf32, #tpu.memory_space<vmem>>, %arg3: memref<32x64xbf16, #tpu.memory_space<vmem>>, %arg4: memref<1x64xf32, #tpu.memory_space<vmem>>, %arg5: memref<8x8xf32, #tpu.memory_space<vmem>>, %arg6: memref<8x8xf32, #tpu.memory_space<vmem>>, %arg7: memref<8x8xbf16, #tpu.memory_space<vmem>>, %arg8: memref<32x32xbf16, #tpu.memory_space<vmem>>, %arg9: memref<1x32xf32, #tpu.memory_space<vmem>>, %arg10: memref<32x128xbf16, #tpu.memory_space<vmem>>, %arg11: memref<64x32xbf16, #tpu.memory_space<vmem>>, %arg12: memref<8x32xbf16, #tpu.memory_space<vmem>>) attributes {dimension_semantics = [#tpu.dimension_semantics<arbitrary>], iteration_bounds = array<i64: 1>, scalar_prefetch = 0 : i64, scratch_operands = 0 : i64, tpu.core_type = #tpu.core_type<tc>, window_params = [{pipeline_mode = #tpu.pipeline_mode<synchronous>, transform_indices = @transform_0, window_bounds = array<i64: 8, 32>}, {pipeline_mode = #tpu.pipeline_mode<synchronous>, transform_indices = @transform_1, window_bounds = array<i64: 1, 32>}, {pipeline_mode = #tpu.pipeline_mode<synchronous>, transform_indices = @transform_2, window_bounds = array<i64: 32, 64>}, {pipeline_mode = #tpu.pipeline_mode<synchronous>, transform_indices = @transform_3, window_bounds = array<i64: 1, 64>}, {pipeline_mode = #tpu.pipeline_mode<synchronous>, transform_indices = @transform_4, window_bounds = array<i64: 8, 8>}, {pipeline_mode = #tpu.pipeline_mode<synchronous>, transform_indices = @transform_5, window_bounds = array<i64: 8, 8>}, {pipeline_mode = #tpu.pipeline_mode<synchronous>, transform_indices = @transform_6, window_bounds = array<i64: 8, 8>}, {pipeline_mode = #tpu.pipeline_mode<synchronous>, transform_indices = @transform_7, window_bounds = array<i64: 32, 32>}, {pipeline_mode = #tpu.pipeline_mode<synchronous>, transform_indices = @transform_8, window_bounds = array<i64: 1, 32>}, {pipeline_mode = #tpu.pipeline_mode<synchronous>, transform_indices = @transform_9, window_bounds = array<i64: 32, 128>}, {pipeline_mode = #tpu.pipeline_mode<synchronous>, transform_indices = @transform_10, window_bounds = array<i64: 64, 32>}, {pipeline_mode = #tpu.pipeline_mode<synchronous>, transform_indices = @transform_11, window_bounds = array<i64: 8, 32>}]} {
    %c0 = arith.constant 0 : index
    %c0_0 = arith.constant 0 : index
    %0 = vector.load %arg1[%c0, %c0_0] : memref<8x32xbf16, #tpu.memory_space<vmem>>, vector<8x32xbf16>
    %1 = arith.extf %0 : vector<8x32xbf16> to vector<8x32xf32>
    %2 = arith.mulf %1, %1 : vector<8x32xf32>
    %cst = arith.constant dense<0.000000e+00> : vector<8xf32>
    %3 = vector.multi_reduction <add>, %2, %cst [1] : vector<8x32xf32> to vector<8xf32>
    %4 = vector.shape_cast %3 : vector<8xf32> to vector<8x1xf32>
    %cst_1 = arith.constant 3.200000e+01 : f32
    %5 = vector.broadcast %cst_1 : f32 to vector<8x1xf32>
    %6 = arith.divf %4, %5 : vector<8x1xf32>
    %cst_2 = arith.constant 9.99999974E-6 : f32
    %7 = vector.broadcast %cst_2 : f32 to vector<8x1xf32>
    %8 = arith.addf %6, %7 : vector<8x1xf32>
    %9 = math.rsqrt %8 : vector<8x1xf32>
    %10 = vector.broadcast %9 : vector<8x1xf32> to vector<8x32xf32>
    %11 = arith.mulf %1, %10 : vector<8x32xf32>
    %c0_3 = arith.constant 0 : index
    %c0_4 = arith.constant 0 : index
    %12 = vector.load %arg2[%c0_3, %c0_4] : memref<1x32xf32, #tpu.memory_space<vmem>>, vector<1x32xf32>
    %13 = vector.broadcast %12 : vector<1x32xf32> to vector<8x32xf32>
    %14 = arith.mulf %11, %13 : vector<8x32xf32>
    %15 = arith.truncf %14 : vector<8x32xf32> to vector<8x32xbf16>
    %c0_5 = arith.constant 0 : index
    %c0_6 = arith.constant 0 : index
    %16 = vector.load %arg3[%c0_5, %c0_6] : memref<32x64xbf16, #tpu.memory_space<vmem>>, vector<32x64xbf16>
    %cst_7 = arith.constant dense<0.000000e+00> : vector<8x64xf32>
    %17 = tpu.matmul %15, %16, %cst_7 {dimension_numbers = #tpu.dot_dimension_numbers<[1], [0], [0], [1], [0, 0, 1, 1], [], []>} : vector<8x32xbf16>, vector<32x64xbf16>, vector<8x64xf32> -> vector<8x64xf32>
    %c0_8 = arith.constant 0 : index
    %c0_9 = arith.constant 0 : index
    %18 = vector.load %arg4[%c0_8, %c0_9] : memref<1x64xf32, #tpu.memory_space<vmem>>, vector<1x64xf32>
    %19 = vector.broadcast %18 : vector<1x64xf32> to vector<8x64xf32>
    %20 = arith.addf %17, %19 : vector<8x64xf32>
    %c0_10 = arith.constant 0 : index
    %c0_11 = arith.constant 0 : index
    %21 = vector.load %arg5[%c0_10, %c0_11] : memref<8x8xf32, #tpu.memory_space<vmem>>, vector<8x8xf32>
    %c0_12 = arith.constant 0 : index
    %c0_13 = arith.constant 0 : index
    %22 = vector.load %arg6[%c0_12, %c0_13] : memref<8x8xf32, #tpu.memory_space<vmem>>, vector<8x8xf32>
    %c0_14 = arith.constant 0 : index
    %c0_15 = arith.constant 0 : index
    %23 = vector.load %arg7[%c0_14, %c0_15] : memref<8x8xbf16, #tpu.memory_space<vmem>>, vector<8x8xbf16>
    %24 = tpu.iota {dimensions = array<i32: 0>} : vector<8x8xi32>
    %25 = tpu.iota {dimensions = array<i32: 1>} : vector<8x8xi32>
    %26 = arith.cmpi sle, %25, %24 : vector<8x8xi32>
    %cst_16 = arith.constant 0.000000e+00 : f32
    %27 = vector.broadcast %cst_16 : f32 to vector<8x32xf32>
    %28 = vector.extract_strided_slice %20 {offsets = [0, 32], sizes = [8, 8], strides = [1, 1]} : vector<8x64xf32> to vector<8x8xf32>
    %29 = arith.truncf %28 : vector<8x8xf32> to vector<8x8xbf16>
    %cst_17 = arith.constant dense<0.000000e+00> : vector<8x8xf32>
    %30 = tpu.matmul %29, %23, %cst_17 {dimension_numbers = #tpu.dot_dimension_numbers<[1], [0], [0], [1], [0, 0, 1, 1], [], []>} : vector<8x8xbf16>, vector<8x8xbf16>, vector<8x8xf32> -> vector<8x8xf32>
    %31 = arith.mulf %28, %21 : vector<8x8xf32>
    %32 = arith.mulf %30, %22 : vector<8x8xf32>
    %33 = arith.addf %31, %32 : vector<8x8xf32>
    %34 = arith.truncf %33 : vector<8x8xf32> to vector<8x8xbf16>
    %35 = vector.extract_strided_slice %20 {offsets = [0, 48], sizes = [8, 8], strides = [1, 1]} : vector<8x64xf32> to vector<8x8xf32>
    %36 = arith.truncf %35 : vector<8x8xf32> to vector<8x8xbf16>
    %37 = vector.extract_strided_slice %20 {offsets = [0, 0], sizes = [8, 8], strides = [1, 1]} : vector<8x64xf32> to vector<8x8xf32>
    %38 = arith.truncf %37 : vector<8x8xf32> to vector<8x8xbf16>
    %cst_18 = arith.constant dense<0.000000e+00> : vector<8x8xf32>
    %39 = tpu.matmul %38, %23, %cst_18 {dimension_numbers = #tpu.dot_dimension_numbers<[1], [0], [0], [1], [0, 0, 1, 1], [], []>} : vector<8x8xbf16>, vector<8x8xbf16>, vector<8x8xf32> -> vector<8x8xf32>
    %40 = arith.mulf %37, %21 : vector<8x8xf32>
    %41 = arith.mulf %39, %22 : vector<8x8xf32>
    %42 = arith.addf %40, %41 : vector<8x8xf32>
    %43 = arith.truncf %42 : vector<8x8xf32> to vector<8x8xbf16>
    %cst_19 = arith.constant dense<0.000000e+00> : vector<8x8xf32>
    %44 = tpu.matmul %43, %34, %cst_19 {dimension_numbers = #tpu.dot_dimension_numbers<[1], [1], [0], [0], [0, 0, 1, 0], [], []>} : vector<8x8xbf16>, vector<8x8xbf16>, vector<8x8xf32> -> vector<8x8xf32>
    %cst_20 = arith.constant 0.353553385 : f32
    %45 = vector.broadcast %cst_20 : f32 to vector<8x8xf32>
    %46 = arith.mulf %44, %45 : vector<8x8xf32>
    %cst_21 = arith.constant -1.000000e+30 : f32
    %47 = vector.broadcast %cst_21 : f32 to vector<8x8xf32>
    %48 = arith.select %26, %46, %47 : vector<8x8xi1>, vector<8x8xf32>
    %cst_22 = arith.constant dense<0xFF800000> : vector<8xf32>
    %49 = vector.multi_reduction <maximumf>, %48, %cst_22 [1] : vector<8x8xf32> to vector<8xf32>
    %50 = vector.shape_cast %49 : vector<8xf32> to vector<8x1xf32>
    %51 = vector.broadcast %50 : vector<8x1xf32> to vector<8x8xf32>
    %52 = arith.subf %48, %51 : vector<8x8xf32>
    %53 = math.exp %52 : vector<8x8xf32>
    %cst_23 = arith.constant dense<0.000000e+00> : vector<8xf32>
    %54 = vector.multi_reduction <add>, %53, %cst_23 [1] : vector<8x8xf32> to vector<8xf32>
    %55 = vector.shape_cast %54 : vector<8xf32> to vector<8x1xf32>
    %56 = arith.truncf %53 : vector<8x8xf32> to vector<8x8xbf16>
    %cst_24 = arith.constant dense<0.000000e+00> : vector<8x8xf32>
    %57 = tpu.matmul %56, %36, %cst_24 {dimension_numbers = #tpu.dot_dimension_numbers<[1], [0], [0], [1], [0, 0, 1, 1], [], []>} : vector<8x8xbf16>, vector<8x8xbf16>, vector<8x8xf32> -> vector<8x8xf32>
    %58 = vector.broadcast %55 : vector<8x1xf32> to vector<8x8xf32>
    %59 = arith.divf %57, %58 : vector<8x8xf32>
    %60 = arith.truncf %59 : vector<8x8xf32> to vector<8x8xbf16>
    %c0_25 = arith.constant 0 : index
    %c0_26 = arith.constant 0 : index
    %61 = vector.load %arg8[%c0_25, %c0_26] : memref<32x32xbf16, #tpu.memory_space<vmem>>, vector<8x32xbf16>
    %cst_27 = arith.constant dense<0.000000e+00> : vector<8x32xf32>
    %62 = tpu.matmul %60, %61, %cst_27 {dimension_numbers = #tpu.dot_dimension_numbers<[1], [0], [0], [1], [0, 0, 1, 1], [], []>} : vector<8x8xbf16>, vector<8x32xbf16>, vector<8x32xf32> -> vector<8x32xf32>
    %63 = arith.addf %27, %62 : vector<8x32xf32>
    %64 = vector.extract_strided_slice %20 {offsets = [0, 8], sizes = [8, 8], strides = [1, 1]} : vector<8x64xf32> to vector<8x8xf32>
    %65 = arith.truncf %64 : vector<8x8xf32> to vector<8x8xbf16>
    %cst_28 = arith.constant dense<0.000000e+00> : vector<8x8xf32>
    %66 = tpu.matmul %65, %23, %cst_28 {dimension_numbers = #tpu.dot_dimension_numbers<[1], [0], [0], [1], [0, 0, 1, 1], [], []>} : vector<8x8xbf16>, vector<8x8xbf16>, vector<8x8xf32> -> vector<8x8xf32>
    %67 = arith.mulf %64, %21 : vector<8x8xf32>
    %68 = arith.mulf %66, %22 : vector<8x8xf32>
    %69 = arith.addf %67, %68 : vector<8x8xf32>
    %70 = arith.truncf %69 : vector<8x8xf32> to vector<8x8xbf16>
    %cst_29 = arith.constant dense<0.000000e+00> : vector<8x8xf32>
    %71 = tpu.matmul %70, %34, %cst_29 {dimension_numbers = #tpu.dot_dimension_numbers<[1], [1], [0], [0], [0, 0, 1, 0], [], []>} : vector<8x8xbf16>, vector<8x8xbf16>, vector<8x8xf32> -> vector<8x8xf32>
    %cst_30 = arith.constant 0.353553385 : f32
    %72 = vector.broadcast %cst_30 : f32 to vector<8x8xf32>
    %73 = arith.mulf %71, %72 : vector<8x8xf32>
    %cst_31 = arith.constant -1.000000e+30 : f32
    %74 = vector.broadcast %cst_31 : f32 to vector<8x8xf32>
    %75 = arith.select %26, %73, %74 : vector<8x8xi1>, vector<8x8xf32>
    %cst_32 = arith.constant dense<0xFF800000> : vector<8xf32>
    %76 = vector.multi_reduction <maximumf>, %75, %cst_32 [1] : vector<8x8xf32> to vector<8xf32>
    %77 = vector.shape_cast %76 : vector<8xf32> to vector<8x1xf32>
    %78 = vector.broadcast %77 : vector<8x1xf32> to vector<8x8xf32>
    %79 = arith.subf %75, %78 : vector<8x8xf32>
    %80 = math.exp %79 : vector<8x8xf32>
    %cst_33 = arith.constant dense<0.000000e+00> : vector<8xf32>
    %81 = vector.multi_reduction <add>, %80, %cst_33 [1] : vector<8x8xf32> to vector<8xf32>
    %82 = vector.shape_cast %81 : vector<8xf32> to vector<8x1xf32>
    %83 = arith.truncf %80 : vector<8x8xf32> to vector<8x8xbf16>
    %cst_34 = arith.constant dense<0.000000e+00> : vector<8x8xf32>
    %84 = tpu.matmul %83, %36, %cst_34 {dimension_numbers = #tpu.dot_dimension_numbers<[1], [0], [0], [1], [0, 0, 1, 1], [], []>} : vector<8x8xbf16>, vector<8x8xbf16>, vector<8x8xf32> -> vector<8x8xf32>
    %85 = vector.broadcast %82 : vector<8x1xf32> to vector<8x8xf32>
    %86 = arith.divf %84, %85 : vector<8x8xf32>
    %87 = arith.truncf %86 : vector<8x8xf32> to vector<8x8xbf16>
    %c8 = arith.constant 8 : index
    %c0_35 = arith.constant 0 : index
    %88 = vector.load %arg8[%c8, %c0_35] : memref<32x32xbf16, #tpu.memory_space<vmem>>, vector<8x32xbf16>
    %cst_36 = arith.constant dense<0.000000e+00> : vector<8x32xf32>
    %89 = tpu.matmul %87, %88, %cst_36 {dimension_numbers = #tpu.dot_dimension_numbers<[1], [0], [0], [1], [0, 0, 1, 1], [], []>} : vector<8x8xbf16>, vector<8x32xbf16>, vector<8x32xf32> -> vector<8x32xf32>
    %90 = arith.addf %63, %89 : vector<8x32xf32>
    %91 = vector.extract_strided_slice %20 {offsets = [0, 40], sizes = [8, 8], strides = [1, 1]} : vector<8x64xf32> to vector<8x8xf32>
    %92 = arith.truncf %91 : vector<8x8xf32> to vector<8x8xbf16>
    %cst_37 = arith.constant dense<0.000000e+00> : vector<8x8xf32>
    %93 = tpu.matmul %92, %23, %cst_37 {dimension_numbers = #tpu.dot_dimension_numbers<[1], [0], [0], [1], [0, 0, 1, 1], [], []>} : vector<8x8xbf16>, vector<8x8xbf16>, vector<8x8xf32> -> vector<8x8xf32>
    %94 = arith.mulf %91, %21 : vector<8x8xf32>
    %95 = arith.mulf %93, %22 : vector<8x8xf32>
    %96 = arith.addf %94, %95 : vector<8x8xf32>
    %97 = arith.truncf %96 : vector<8x8xf32> to vector<8x8xbf16>
    %98 = vector.extract_strided_slice %20 {offsets = [0, 56], sizes = [8, 8], strides = [1, 1]} : vector<8x64xf32> to vector<8x8xf32>
    %99 = arith.truncf %98 : vector<8x8xf32> to vector<8x8xbf16>
    %100 = vector.extract_strided_slice %20 {offsets = [0, 16], sizes = [8, 8], strides = [1, 1]} : vector<8x64xf32> to vector<8x8xf32>
    %101 = arith.truncf %100 : vector<8x8xf32> to vector<8x8xbf16>
    %cst_38 = arith.constant dense<0.000000e+00> : vector<8x8xf32>
    %102 = tpu.matmul %101, %23, %cst_38 {dimension_numbers = #tpu.dot_dimension_numbers<[1], [0], [0], [1], [0, 0, 1, 1], [], []>} : vector<8x8xbf16>, vector<8x8xbf16>, vector<8x8xf32> -> vector<8x8xf32>
    %103 = arith.mulf %100, %21 : vector<8x8xf32>
    %104 = arith.mulf %102, %22 : vector<8x8xf32>
    %105 = arith.addf %103, %104 : vector<8x8xf32>
    %106 = arith.truncf %105 : vector<8x8xf32> to vector<8x8xbf16>
    %cst_39 = arith.constant dense<0.000000e+00> : vector<8x8xf32>
    %107 = tpu.matmul %106, %97, %cst_39 {dimension_numbers = #tpu.dot_dimension_numbers<[1], [1], [0], [0], [0, 0, 1, 0], [], []>} : vector<8x8xbf16>, vector<8x8xbf16>, vector<8x8xf32> -> vector<8x8xf32>
    %cst_40 = arith.constant 0.353553385 : f32
    %108 = vector.broadcast %cst_40 : f32 to vector<8x8xf32>
    %109 = arith.mulf %107, %108 : vector<8x8xf32>
    %cst_41 = arith.constant -1.000000e+30 : f32
    %110 = vector.broadcast %cst_41 : f32 to vector<8x8xf32>
    %111 = arith.select %26, %109, %110 : vector<8x8xi1>, vector<8x8xf32>
    %cst_42 = arith.constant dense<0xFF800000> : vector<8xf32>
    %112 = vector.multi_reduction <maximumf>, %111, %cst_42 [1] : vector<8x8xf32> to vector<8xf32>
    %113 = vector.shape_cast %112 : vector<8xf32> to vector<8x1xf32>
    %114 = vector.broadcast %113 : vector<8x1xf32> to vector<8x8xf32>
    %115 = arith.subf %111, %114 : vector<8x8xf32>
    %116 = math.exp %115 : vector<8x8xf32>
    %cst_43 = arith.constant dense<0.000000e+00> : vector<8xf32>
    %117 = vector.multi_reduction <add>, %116, %cst_43 [1] : vector<8x8xf32> to vector<8xf32>
    %118 = vector.shape_cast %117 : vector<8xf32> to vector<8x1xf32>
    %119 = arith.truncf %116 : vector<8x8xf32> to vector<8x8xbf16>
    %cst_44 = arith.constant dense<0.000000e+00> : vector<8x8xf32>
    %120 = tpu.matmul %119, %99, %cst_44 {dimension_numbers = #tpu.dot_dimension_numbers<[1], [0], [0], [1], [0, 0, 1, 1], [], []>} : vector<8x8xbf16>, vector<8x8xbf16>, vector<8x8xf32> -> vector<8x8xf32>
    %121 = vector.broadcast %118 : vector<8x1xf32> to vector<8x8xf32>
    %122 = arith.divf %120, %121 : vector<8x8xf32>
    %123 = arith.truncf %122 : vector<8x8xf32> to vector<8x8xbf16>
    %c16 = arith.constant 16 : index
    %c0_45 = arith.constant 0 : index
    %124 = vector.load %arg8[%c16, %c0_45] : memref<32x32xbf16, #tpu.memory_space<vmem>>, vector<8x32xbf16>
    %cst_46 = arith.constant dense<0.000000e+00> : vector<8x32xf32>
    %125 = tpu.matmul %123, %124, %cst_46 {dimension_numbers = #tpu.dot_dimension_numbers<[1], [0], [0], [1], [0, 0, 1, 1], [], []>} : vector<8x8xbf16>, vector<8x32xbf16>, vector<8x32xf32> -> vector<8x32xf32>
    %126 = arith.addf %90, %125 : vector<8x32xf32>
    %127 = vector.extract_strided_slice %20 {offsets = [0, 24], sizes = [8, 8], strides = [1, 1]} : vector<8x64xf32> to vector<8x8xf32>
    %128 = arith.truncf %127 : vector<8x8xf32> to vector<8x8xbf16>
    %cst_47 = arith.constant dense<0.000000e+00> : vector<8x8xf32>
    %129 = tpu.matmul %128, %23, %cst_47 {dimension_numbers = #tpu.dot_dimension_numbers<[1], [0], [0], [1], [0, 0, 1, 1], [], []>} : vector<8x8xbf16>, vector<8x8xbf16>, vector<8x8xf32> -> vector<8x8xf32>
    %130 = arith.mulf %127, %21 : vector<8x8xf32>
    %131 = arith.mulf %129, %22 : vector<8x8xf32>
    %132 = arith.addf %130, %131 : vector<8x8xf32>
    %133 = arith.truncf %132 : vector<8x8xf32> to vector<8x8xbf16>
    %cst_48 = arith.constant dense<0.000000e+00> : vector<8x8xf32>
    %134 = tpu.matmul %133, %97, %cst_48 {dimension_numbers = #tpu.dot_dimension_numbers<[1], [1], [0], [0], [0, 0, 1, 0], [], []>} : vector<8x8xbf16>, vector<8x8xbf16>, vector<8x8xf32> -> vector<8x8xf32>
    %cst_49 = arith.constant 0.353553385 : f32
    %135 = vector.broadcast %cst_49 : f32 to vector<8x8xf32>
    %136 = arith.mulf %134, %135 : vector<8x8xf32>
    %cst_50 = arith.constant -1.000000e+30 : f32
    %137 = vector.broadcast %cst_50 : f32 to vector<8x8xf32>
    %138 = arith.select %26, %136, %137 : vector<8x8xi1>, vector<8x8xf32>
    %cst_51 = arith.constant dense<0xFF800000> : vector<8xf32>
    %139 = vector.multi_reduction <maximumf>, %138, %cst_51 [1] : vector<8x8xf32> to vector<8xf32>
    %140 = vector.shape_cast %139 : vector<8xf32> to vector<8x1xf32>
    %141 = vector.broadcast %140 : vector<8x1xf32> to vector<8x8xf32>
    %142 = arith.subf %138, %141 : vector<8x8xf32>
    %143 = math.exp %142 : vector<8x8xf32>
    %cst_52 = arith.constant dense<0.000000e+00> : vector<8xf32>
    %144 = vector.multi_reduction <add>, %143, %cst_52 [1] : vector<8x8xf32> to vector<8xf32>
    %145 = vector.shape_cast %144 : vector<8xf32> to vector<8x1xf32>
    %146 = arith.truncf %143 : vector<8x8xf32> to vector<8x8xbf16>
    %cst_53 = arith.constant dense<0.000000e+00> : vector<8x8xf32>
    %147 = tpu.matmul %146, %99, %cst_53 {dimension_numbers = #tpu.dot_dimension_numbers<[1], [0], [0], [1], [0, 0, 1, 1], [], []>} : vector<8x8xbf16>, vector<8x8xbf16>, vector<8x8xf32> -> vector<8x8xf32>
    %148 = vector.broadcast %145 : vector<8x1xf32> to vector<8x8xf32>
    %149 = arith.divf %147, %148 : vector<8x8xf32>
    %150 = arith.truncf %149 : vector<8x8xf32> to vector<8x8xbf16>
    %c24 = arith.constant 24 : index
    %c0_54 = arith.constant 0 : index
    %151 = vector.load %arg8[%c24, %c0_54] : memref<32x32xbf16, #tpu.memory_space<vmem>>, vector<8x32xbf16>
    %cst_55 = arith.constant dense<0.000000e+00> : vector<8x32xf32>
    %152 = tpu.matmul %150, %151, %cst_55 {dimension_numbers = #tpu.dot_dimension_numbers<[1], [0], [0], [1], [0, 0, 1, 1], [], []>} : vector<8x8xbf16>, vector<8x32xbf16>, vector<8x32xf32> -> vector<8x32xf32>
    %153 = arith.addf %126, %152 : vector<8x32xf32>
    %154 = arith.addf %1, %153 : vector<8x32xf32>
    %155 = arith.mulf %154, %154 : vector<8x32xf32>
    %cst_56 = arith.constant dense<0.000000e+00> : vector<8xf32>
    %156 = vector.multi_reduction <add>, %155, %cst_56 [1] : vector<8x32xf32> to vector<8xf32>
    %157 = vector.shape_cast %156 : vector<8xf32> to vector<8x1xf32>
    %cst_57 = arith.constant 3.200000e+01 : f32
    %158 = vector.broadcast %cst_57 : f32 to vector<8x1xf32>
    %159 = arith.divf %157, %158 : vector<8x1xf32>
    %cst_58 = arith.constant 9.99999974E-6 : f32
    %160 = vector.broadcast %cst_58 : f32 to vector<8x1xf32>
    %161 = arith.addf %159, %160 : vector<8x1xf32>
    %162 = math.rsqrt %161 : vector<8x1xf32>
    %163 = vector.broadcast %162 : vector<8x1xf32> to vector<8x32xf32>
    %164 = arith.mulf %154, %163 : vector<8x32xf32>
    %c0_59 = arith.constant 0 : index
    %c0_60 = arith.constant 0 : index
    %165 = vector.load %arg9[%c0_59, %c0_60] : memref<1x32xf32, #tpu.memory_space<vmem>>, vector<1x32xf32>
    %166 = vector.broadcast %165 : vector<1x32xf32> to vector<8x32xf32>
    %167 = arith.mulf %164, %166 : vector<8x32xf32>
    %168 = arith.truncf %167 : vector<8x32xf32> to vector<8x32xbf16>
    %c0_61 = arith.constant 0 : index
    %c0_62 = arith.constant 0 : index
    %169 = vector.load %arg10[%c0_61, %c0_62] : memref<32x128xbf16, #tpu.memory_space<vmem>>, vector<32x128xbf16>
    %cst_63 = arith.constant dense<0.000000e+00> : vector<8x128xf32>
    %170 = tpu.matmul %168, %169, %cst_63 {dimension_numbers = #tpu.dot_dimension_numbers<[1], [0], [0], [1], [0, 0, 1, 1], [], []>} : vector<8x32xbf16>, vector<32x128xbf16>, vector<8x128xf32> -> vector<8x128xf32>
    %171 = vector.extract_strided_slice %170 {offsets = [0, 0], sizes = [8, 64], strides = [1, 1]} : vector<8x128xf32> to vector<8x64xf32>
    %172 = vector.extract_strided_slice %170 {offsets = [0, 64], sizes = [8, 64], strides = [1, 1]} : vector<8x128xf32> to vector<8x64xf32>
    %173 = arith.negf %171 : vector<8x64xf32>
    %174 = math.exp %173 : vector<8x64xf32>
    %cst_64 = arith.constant 1.000000e+00 : f32
    %175 = vector.broadcast %cst_64 : f32 to vector<8x64xf32>
    %176 = arith.addf %175, %174 : vector<8x64xf32>
    %177 = arith.divf %175, %176 : vector<8x64xf32>
    %178 = arith.mulf %171, %177 : vector<8x64xf32>
    %179 = arith.mulf %178, %172 : vector<8x64xf32>
    %180 = arith.truncf %179 : vector<8x64xf32> to vector<8x64xbf16>
    %c0_65 = arith.constant 0 : index
    %c0_66 = arith.constant 0 : index
    %181 = vector.load %arg11[%c0_65, %c0_66] : memref<64x32xbf16, #tpu.memory_space<vmem>>, vector<64x32xbf16>
    %cst_67 = arith.constant dense<0.000000e+00> : vector<8x32xf32>
    %182 = tpu.matmul %180, %181, %cst_67 {dimension_numbers = #tpu.dot_dimension_numbers<[1], [0], [0], [1], [0, 0, 1, 1], [], []>} : vector<8x64xbf16>, vector<64x32xbf16>, vector<8x32xf32> -> vector<8x32xf32>
    %183 = arith.addf %154, %182 : vector<8x32xf32>
    %184 = arith.truncf %183 : vector<8x32xf32> to vector<8x32xbf16>
    %c0_68 = arith.constant 0 : index
    %c0_69 = arith.constant 0 : index
    %185 = vector.load %arg12[%c0_68, %c0_69] : memref<8x32xbf16, #tpu.memory_space<vmem>>, vector<8x32xbf16>
    tpu.vector_store %arg12[%c0_68, %c0_69], %184 {strides = array<i32>} : memref<8x32xbf16, #tpu.memory_space<vmem>>, vector<8x32xbf16>,
    return
  }
  func.func @transform_0(%arg0: i32) -> (i32, i32) {
    %c0_i32 = arith.constant 0 : i32
    %c0_i32_0 = arith.constant 0 : i32
    %c0_i32_1 = arith.constant 0 : i32
    return %c0_i32, %c0_i32_0 : i32, i32
  }
  func.func @transform_1(%arg0: i32) -> (i32, i32) {
    %c0_i32 = arith.constant 0 : i32
    %c0_i32_0 = arith.constant 0 : i32
    %c0_i32_1 = arith.constant 0 : i32
    return %c0_i32, %c0_i32_0 : i32, i32
  }
  func.func @transform_2(%arg0: i32) -> (i32, i32) {
    %c0_i32 = arith.constant 0 : i32
    %c0_i32_0 = arith.constant 0 : i32
    %c0_i32_1 = arith.constant 0 : i32
    return %c0_i32, %c0_i32_0 : i32, i32
  }
  func.func @transform_3(%arg0: i32) -> (i32, i32) {
    %c0_i32 = arith.constant 0 : i32
    %c0_i32_0 = arith.constant 0 : i32
    %c0_i32_1 = arith.constant 0 : i32
    return %c0_i32, %c0_i32_0 : i32, i32
  }
  func.func @transform_4(%arg0: i32) -> (i32, i32) {
    %c0_i32 = arith.constant 0 : i32
    %c0_i32_0 = arith.constant 0 : i32
    %c0_i32_1 = arith.constant 0 : i32
    return %c0_i32, %c0_i32_0 : i32, i32
  }
  func.func @transform_5(%arg0: i32) -> (i32, i32) {
    %c0_i32 = arith.constant 0 : i32
    %c0_i32_0 = arith.constant 0 : i32
    %c0_i32_1 = arith.constant 0 : i32
    return %c0_i32, %c0_i32_0 : i32, i32
  }
  func.func @transform_6(%arg0: i32) -> (i32, i32) {
    %c0_i32 = arith.constant 0 : i32
    %c0_i32_0 = arith.constant 0 : i32
    %c0_i32_1 = arith.constant 0 : i32
    return %c0_i32, %c0_i32_0 : i32, i32
  }
  func.func @transform_7(%arg0: i32) -> (i32, i32) {
    %c0_i32 = arith.constant 0 : i32
    %c0_i32_0 = arith.constant 0 : i32
    %c0_i32_1 = arith.constant 0 : i32
    return %c0_i32, %c0_i32_0 : i32, i32
  }
  func.func @transform_8(%arg0: i32) -> (i32, i32) {
    %c0_i32 = arith.constant 0 : i32
    %c0_i32_0 = arith.constant 0 : i32
    %c0_i32_1 = arith.constant 0 : i32
    return %c0_i32, %c0_i32_0 : i32, i32
  }
  func.func @transform_9(%arg0: i32) -> (i32, i32) {
    %c0_i32 = arith.constant 0 : i32
    %c0_i32_0 = arith.constant 0 : i32
    %c0_i32_1 = arith.constant 0 : i32
    return %c0_i32, %c0_i32_0 : i32, i32
  }
  func.func @transform_10(%arg0: i32) -> (i32, i32) {
    %c0_i32 = arith.constant 0 : i32
    %c0_i32_0 = arith.constant 0 : i32
    %c0_i32_1 = arith.constant 0 : i32
    return %c0_i32, %c0_i32_0 : i32, i32
  }
  func.func @transform_11(%arg0: i32) -> (i32, i32) {
    %c0_i32 = arith.constant 0 : i32
    %c0_i32_0 = arith.constant 0 : i32
    %c0_i32_1 = arith.constant 0 : i32
    return %c0_i32, %c0_i32_0 : i32, i32
  }
}

</mosaic_0001>

<bundles_post_ra>
// kernel: tpu_custom_call.1
= control target key start
LH: loop header
LB: loop body
LE: loop exit
PB: predicated region body
PF: predicated region fallthrough
CT: control target
= control target key end

     0   :  { %16 = vsyncpa [#allocation3], 0  ;;  %s1456_s0 = inlined_call_operand.hbm [shape: bf16[8,32], index: 0, kind: input, shape index: {}, may-alias: {0,11}]   ;;  %s1457_s1 = inlined_call_operand.vmem [shape: f32[1,32], index: 1, kind: input, shape index: {}]   ;;  %s1458_s2 = inlined_call_operand.vmem [shape: bf16[32,64], index: 2, kind: input, shape index: {}]   ;;  %s1459_s3 = inlined_call_operand.hbm [shape: f32[1,64], index: 3, kind: input, shape index: {}]   ;;  %s1460_s4 = inlined_call_operand.hbm [shape: f32[8,8], index: 4, kind: input, shape index: {}]   ;;  %s1461_s5 = inlined_call_operand.hbm [shape: f32[8,8], index: 5, kind: input, shape index: {}]   ;;  %s1462_s6 = inlined_call_operand.hbm [shape: bf16[8,8], index: 6, kind: input, shape index: {}]   ;;  %s1463_s7 = inlined_call_operand.vmem [shape: bf16[32,32], index: 7, kind: input, shape index: {}]   ;;  %s1464_s8 = inlined_call_operand.hbm [shape: f32[1,32], index: 8, kind: input, shape index: {}]   ;;  %s1465_s9 = inlined_call_operand.vmem [shape: bf16[32,128], index: 9, kind: input, shape index: {}]   ;;  %s1466_s10 = inlined_call_operand.vmem [shape: bf16[64,32], index: 10, kind: input, shape index: {}]   ;;  %s1467_s11 = inlined_call_operand.hbm [shape: bf16[8,32], index: 11, kind: output, shape index: {}, may-alias: {0,11}]  }
   0x1   :  { %17 = vsyncpa [#allocation6], 0 }
   0x2   :  { %18 = vsyncpa [#allocation9], 0 }
   0x3   :  { %19 = vsyncpa [#allocation12], 0  ;;  %s41_s19 = sshll.u32 %s1459_s3, 4  ;;  %s42_s19 = int_to_ptr.hbm [resolvable:$true] %s41_s19 }
   0x4   :  { %20 = vsyncpa [#allocation4], 0  ;;  %s1170_s20 = smov [#allocation5]   ;;  %s63_s24 = sshll.u32 %s1461_s5, 4  ;;  %s64_s24 = int_to_ptr.hbm [resolvable:$true] %s63_s24 }
   0x5   :  { %s43_s21 = sshll.u32 %s1170_s20, 4  ;;  %s1171_s25 = smov [#allocation8]   ;;  %s44_s21 = int_to_ptr.vmem [resolvable:$true] %s43_s21 }
   0x6   :  { %46 = dma.hbm_to_vmem [thread:$0]  %s42_s19, 16, %s44_s21, [#allocation6]  }
   0x7   :  { %s65_s26 = sshll.u32 %s1171_s25, 4  ;;  %s26_s29 = sshll.u32 %s1456_s0, 4  ;;  %s66_s26 = int_to_ptr.vmem [resolvable:$true] %s65_s26  ;;  %s27_s29 = int_to_ptr.hbm [resolvable:$true] %s26_s29 }
   0x8   :  { %68 = dma.hbm_to_vmem [thread:$0]  %s64_s24, 128, %s66_s26, [#allocation9]  }
   0x9   :  { %s52_s12 = sshll.u32 %s1460_s4, 4  ;;  %s1172_s13 = smov [#allocation2]   ;;  %s53_s12 = int_to_ptr.hbm [resolvable:$true] %s52_s12 }
   0xa   :  { %s28_s14 = sshll.u32 %s1172_s13, 4  ;;  %s1173_s5 = smov [#allocation7]   ;;  %s29_s14 = int_to_ptr.vmem [resolvable:$true] %s28_s14 }
   0xb   :  { %31 = dma.hbm_to_vmem [thread:$0]  %s27_s29, 64, %s29_s14, [#allocation3]  }
   0xc   :  { %s54_s15 = sshll.u32 %s1173_s5, 4  ;;  %s74_s18 = sshll.u32 %s1462_s6, 4  ;;  %s55_s15 = int_to_ptr.vmem [resolvable:$true] %s54_s15  ;;  %s75_s18 = int_to_ptr.hbm [resolvable:$true] %s74_s18 }
   0xd   :  { %57 = dma.hbm_to_vmem [thread:$0]  %s53_s12, 128, %s55_s15, [#allocation6]  }
   0xe   :  { %s87_s20 = sshll.u32 %s1464_s8, 4  ;;  %s1174_s21 = smov [#allocation10]   ;;  %s88_s20 = int_to_ptr.hbm [resolvable:$true] %s87_s20 }
   0xf   :  { %s76_s4 = sshll.u32 %s1174_s21, 4  ;;  %s1175_s22 = smov [#allocation11]   ;;  %s77_s4 = int_to_ptr.vmem [resolvable:$true] %s76_s4 }
  0x10   :  { %79 = dma.hbm_to_vmem [thread:$0]  %s75_s18, 64, %s77_s4, [#allocation9]  }
  0x11   :  { %s89_s23 = sshll.u32 %s1175_s22, 4  ;;  %s90_s23 = int_to_ptr.vmem [resolvable:$true] %s89_s23 }
  0x12   :  { %92 = dma.hbm_to_vmem [thread:$0]  %s88_s20, 16, %s90_s23, [#allocation12]  }
  0x13   :  { %1160 = dma.done.wait [#allocation3], 64  }
  0x14   :  { %1161 = vsyncadd [#allocation3], 4294967232 }
  0x15   :  { %1162 = dma.done.wait [#allocation6], 144  }
  0x16   :  { %1163 = vsyncadd [#allocation6], 4294967152 }
  0x17   :  { %1164 = dma.done.wait [#allocation9], 192  }
  0x18   :  { %1165 = vsyncadd [#allocation9], 4294967104 }
  0x19   :  { %1166 = dma.done.wait [#allocation12], 16  }
  0x1a   :  { %1167 = vsyncadd [#allocation12], 4294967280  ;;  %v122_v0 = vld [vmem:[#allocation2] sm:$0xf]  ;;  %vm125_vm0 = vcmask 261120   ;;  %v1176_v4 = vmov 32.0  }
  0x1b   :  { %v1269_v1 = vunpack.c.l.bf16 %v122_v0  ;;  %966 = vrcp.f32 %v1176_v4  ;;  %v935_v8 = vld [vmem:[%s1458_s2 + $0x8] sm:$0xff]  ;;  %v934_v10 = vld [vmem:[%s1458_s2] sm:$0xff]  ;;  %v193_v27 = vld [vmem:[#allocation10] sm:$0xf]  ;;  %vm207_vm5 = vcmask 1043456   ;;  %vm203_vm6 = vcmask 64512  }
  0x1c   :  { %184 = vmatpush.bf16.msra.mxu0 %v935_v8  ;;  %v963_v22 = vld [vmem:[%s1457_s1] ss:$0 sm:$0xff]  ;;  %v1289_v28 = vsel %vm207_vm5, %v193_v27, 0  ;;  %v964_v29 = vld [vmem:[#allocation5] ss:$0 sm:$0xff]  ;;  %s1177_s1 = smov 120  }
  0x1d   :  { %v124_v2 = vmul.f32 %v1269_v1, %v1269_v1  ;;  %246 = vmatpush.bf16.msra.mxu2 %v1289_v28  ;;  %218 = vmatpush.bf16.msra.mxu1 %v1289_v28  ;;  %s1178_s27 = smov 96   ;;  %v1306_v34 = vld [vmem:[#allocation7] sm:$0xff]  ;;  %s1179_s28 = smov 32   ;;  %v1317_v41 = vld [vmem:[#allocation8] sm:$0xff] }
  0x1e   :  { %s1180_s29 = smov 80   ;;  %s1181_s3 = smov 112  }
  0x1f   :  { %v126_v3 = vsel %vm125_vm0, %v124_v2, 0.0  ;;  %s1182_s30 = smov 40   ;;  %s1183_s12 = smov 8  }
  0x20   :  { %127 = vadd.xlane.f32.xlu0 %v126_v3  ;;  %185 = vmatpush.bf16.msra.mxu0 %v934_v10  ;;  %s1184_s13 = smov 88   ;;  %s1185_s14 = smov 104   ;;  %v194_v3 = vlaneseq }
  0x21   :  { %v967_v5 = vpop.eup %966  ;;  %340 = vmatpush.bf16.msrb.mxu2 %v1289_v28  ;;  %s1186_s5 = smov 16   ;;  %s1187_s17 = smov 24  }
  0x22   :  { %v130_v6 = vmul.f32 32.0, %v967_v5  ;;  %vm134_vm1 = vweird.f32 %v967_v5  ;;  %v1341_v4 = vshrl.u32 %v194_v3, 7  ;;  %s1188_s18 = smov 72  }
  0x24   :  { %v131_v7 = vsub.f32 1.0, %v130_v6 }
  0x26   :  { %v132_v9 = vmul.f32 %v967_v5, %v131_v7 }
  0x28   :  { %v133_v11 = vadd.f32 %v967_v5, %v132_v9 }
  0x2a   :  { %v1280_v12 = vsel %vm134_vm1, %v967_v5, %v133_v11  ;;  %v1343_v5 = vand.u32 127, %v194_v3 }
  0x2c   :  { %vm198_vm7 = vcmp.le.s32.totalorder %v1343_v5, %v1341_v4 }
  0x93   :  { %v128_v13 = vpop.xlane.xlu0 %127 }
  0x94   :  { %v136_v14 = vmul.f32 %v1280_v12, %v128_v13 }
  0x96   :  { %v137_v15 = vadd.f32 1e-05, %v136_v14 }
  0x98   :  { %968 = vrsqrt.f32 %v137_v15  ;;  %vm144_vm3 = vweird.f32 %v137_v15 }
  0x9e   :  { %v969_v16 = vpop.eup %968 }
  0x9f   :  { %v139_v17 = vmul.f32 %v969_v16, %v137_v15  ;;  %vm145_vm2 = vweird.f32 %v969_v16 }
  0xa0   :  { %vm146_vm4 = vmor %vm144_vm3, %vm145_vm2 }
  0xa1   :  { %v140_v18 = vmul.f32 %v969_v16, %v139_v17 }
  0xa3   :  { %v141_v19 = vmul.f32 0.5, %v140_v18 }
  0xa5   :  { %v142_v20 = vsub.f32 1.5, %v141_v19 }
  0xa7   :  { %v143_v21 = vmul.f32 %v969_v16, %v142_v20 }
  0xa9   :  { %v147_v23 = vsel %vm146_vm4, %v969_v16, %v143_v21 }
  0xaa   :  { %v148_v24 = vmul.f32 %v147_v23, %v1269_v1 }
  0xac   :  { %v153_v25 = vmul.f32 %v963_v22, %v148_v24 }
  0xae   :  { %v154_v26 = vpack.c.bf16 %v153_v25, %v153_v25 }
  0xb0   :  { %888 = vmatmul.msk.bf16.vlgmr.msra.gmra.mxu0 %vm125_vm0, %v154_v26 }
 0x12d   :  { %v187_v30 = vpop.f32.mrf.mxu0 }
 0x12e   :  { %v1294_v31 = vadd.f32 %v964_v29, %v187_v30 }
 0x130   :  { %v1298_v32 = vpack.c.bf16 %v1294_v31, %v1294_v31  ;;  %v252_v60 = vmul.f32 %v1306_v34, %v1294_v31 }
 0x132   :  { %328 = vrot.lane.b32.xlu1 %v1298_v32, %s1177_s1  ;;  %201 = vrot.lane.b32.xlu0 %v1298_v32, %s1178_s27 }
 0x133   :  { %890 = vmatmul.msk.bf16.vlgmr.msra.gmra.mxu2 %vm203_vm6, %v1298_v32 }
 0x135   :  { %v189_v33 = vpop.f32.mrf.mxu0 }
 0x13a   :  { %225 = vrot.lane.b32.xlu1 %v1306_v34, %s1179_s28  ;;  %290 = vrot.lane.b32.xlu0 %v1298_v32, %s1180_s29 }
 0x142   :  { %488 = vrot.lane.b32.xlu0 %v1298_v32, %s1181_s3 }
 0x14a   :  { %477 = vrot.lane.b32.xlu0 %v1306_v34, %s1182_s30 }
 0x1a4   :  { %v329_v35 = vpop.permute.xlu1 %328  ;;  %v202_v36 = vpop.permute.xlu0 %201 }
 0x1a5   :  { %889 = vmatmul.msk.bf16.vlgmr.msra.gmra.mxu1 %vm203_vm6, %v202_v36  ;;  %893 = vmatmul.msk.bf16.vlgmr.msrb.gmra.mxu2 %vm203_vm6, %v329_v35 }
 0x1ac   :  { %v291_v37 = vpop.permute.xlu0 %290  ;;  %v226_v48 = vpop.permute.xlu1 %225 }
 0x1ad   :  { %v296_v38 = vsel %vm207_vm5, %v291_v37, 0  ;;  %v228_v49 = vmul.f32 %v226_v48, %v1294_v31 }
 0x1ae   :  { %305 = vmatpush.bf16.msrb.mxu1 %v296_v38 }
 0x1b4   :  { %v489_v20 = vpop.permute.xlu0 %488 }
 0x1b6   :  { %v248_v39 = vpop.f32.mrf.mxu2 }
 0x1b7   :  { %v253_v58 = vmul.f32 %v248_v39, %v1317_v41 }
 0x1b9   :  { %v254_v62 = vadd.f32 %v253_v58, %v252_v60 }
 0x1bb   :  { %v255_v63 = vpack.c.bf16 %v254_v62, %v254_v62 }
 0x1bc   :  { %v478_v21 = vpop.permute.xlu0 %477 }
 0x1bd   :  { %v480_v62 = vmul.f32 %v478_v21, %v1294_v31 }
 0x1be   :  { %v250_v40 = vpop.f32.mrf.mxu2 }
 0x1bf   :  { %v420_v40 = vld [vmem:[%s1463_s7 + $0x4] sm:$0xf] }
 0x222   :  { %v220_v42 = vpop.f32.mrf.mxu1 }
 0x223   :  { %v229_v43 = vmul.f32 %v220_v42, %v1317_v41  ;;  %v425_v42 = vsel %vm207_vm5, %v420_v40, 0 }
 0x224   :  { %434 = vmatpush.bf16.msra.mxu1 %v425_v42 }
 0x225   :  { %231 = vrot.lane.b32.xlu2 %v229_v43, %s1179_s28 }
 0x228   :  { %v342_v44 = vpop.f32.mrf.mxu2 }
 0x229   :  { %v350_v45 = vmul.f32 %v342_v44, %v1317_v41 }
 0x22a   :  { %v222_v46 = vpop.f32.mrf.mxu1 }
 0x22b   :  { %352 = vrot.lane.b32.xlu1 %v350_v45, %s1183_s12 }
 0x22d   :  { %346 = vrot.lane.b32.xlu2 %v1306_v34, %s1183_s12 }
 0x230   :  { %v344_v47 = vpop.f32.mrf.mxu2 }
 0x27f   :  { %v232_v50 = vpop.permute.xlu2 %231 }
 0x280   :  { %v234_v51 = vadd.f32 %v232_v50, %v228_v49 }
 0x282   :  { %v235_v52 = vpack.c.bf16 %v234_v51, %v234_v51 }
 0x284   :  { %257 = vrot.lane.b32.xlu2 %v235_v52, %s1178_s27  ;;  %s1189_s27 = smov 64  }
 0x287   :  { %v347_v53 = vpop.permute.xlu2 %346 }
 0x288   :  { %v349_v54 = vmul.f32 %v347_v53, %v1294_v31 }
 0x29d   :  { %v353_v55 = vpop.permute.xlu1 %352 }
 0x29e   :  { %v355_v56 = vadd.f32 %v353_v55, %v349_v54 }
 0x2a0   :  { %v356_v57 = vpack.c.bf16 %v355_v56, %v355_v56 }
 0x2a2   :  { %358 = vrot.lane.b32.xlu1 %v356_v57, %s1177_s1 }
 0x2aa   :  { %459 = vrot.lane.b32.xlu1 %v1298_v32, %s1184_s13 }
 0x2b2   :  { %612 = vrot.lane.b32.xlu1 %v1298_v32, %s1185_s14 }
 0x2ba   :  { %506 = vrot.lane.b32.xlu1 %v1306_v34, %s1186_s5 }
 0x2de   :  { %v258_v59 = vpop.permute.xlu2 %257 }
 0x2df   :  { %v263_v61 = vsel %vm203_vm6, %v258_v59, 0 }
 0x2e0   :  { %272 = vmatpush.bf16.xpose.msra.mxu3 %v263_v61  ;;  %370 = vmatpush.bf16.xpose.msrb.mxu0 %v263_v61 }
 0x2e7   :  { %891 = vmatmul.msk.bf16.vlgmr.msra.gmra.mxu3 %vm203_vm6, %v255_v63 }
 0x2e8   :  { %398 = vmatpush.bf16.msrb.mxu3 %v296_v38  ;;  %471 = vmatpush.bf16.msra.mxu0 %v1289_v28 }
 0x2ec   :  { %500 = vmatpush.bf16.msra.mxu3 %v1289_v28 }
 0x314   :  { %v359_v0 = vpop.permute.xlu1 %358 }
 0x315   :  { %894 = vmatmul.msk.bf16.vlgmr.msrb.gmra.mxu0 %vm203_vm6, %v359_v0 }
 0x31c   :  { %v460_v2 = vpop.permute.xlu1 %459 }
 0x324   :  { %v613_v37 = vpop.permute.xlu1 %612 }
 0x325   :  { %898 = vmatmul.msk.bf16.vlgmr.msra.gmra.mxu0 %vm203_vm6, %v460_v2 }
 0x32c   :  { %v507_v59 = vpop.permute.xlu1 %506 }
 0x36a   :  { %v274_v6 = vpop.f32.mrf.mxu3 }
 0x36b   :  { %v278_v7 = vmul.f32 0.35355338, %v274_v6 }
 0x36d   :  { %v279_v8 = vsel %vm198_vm7, %v278_v7, -1e+30 }
 0x36e   :  { %v280_v9 = vsel %vm203_vm6, %v279_v8, -inf }
 0x36f   :  { %281 = vmax.xlane.f32.xlu0 %v280_v9 }
 0x372   :  { %v276_v10 = vpop.f32.mrf.mxu3 }
 0x392   :  { %v372_v11 = vpop.f32.mrf.mxu0 }
 0x393   :  { %v376_v13 = vmul.f32 0.35355338, %v372_v11 }
 0x395   :  { %v377_v14 = vsel %vm198_vm7, %v376_v13, -1e+30 }
 0x396   :  { %v378_v15 = vsel %vm203_vm6, %v377_v14, -inf }
 0x397   :  { %379 = vmax.xlane.f32.xlu2 %v378_v15 }
 0x39a   :  { %v374_v16 = vpop.f32.mrf.mxu0 }
 0x3a2   :  { %v473_v17 = vpop.f32.mrf.mxu0 }
 0x3a3   :  { %v481_v18 = vmul.f32 %v473_v17, %v1317_v41 }
 0x3a5   :  { %483 = vrot.lane.b32.xlu1 %v481_v18, %s1182_s30 }
 0x3aa   :  { %v475_v19 = vpop.f32.mrf.mxu0 }
 0x3e2   :  { %v282_v22 = vpop.xlane.xlu0 %281 }
 0x3e3   :  { %v283_v23 = vsub.f32 %v279_v8, %v282_v22  ;;  %v509_v8 = vmul.f32 %v507_v59, %v1294_v31 }
 0x3e5   :  { %v284_v24 = vmul.f32 1.442695, %v283_v23 }
 0x3e7   :  { %970 = vpow2.f32 %v284_v24 }
 0x3ed   :  { %v1357_v25 = vpop.eup %970 }
 0x3ee   :  { %v289_v26 = vpack.c.bf16 %v1357_v25, %v1357_v25  ;;  %v286_v19 = vsel %vm203_vm6, %v1357_v25, 0.0 }
 0x3f0   :  { %892 = vmatmul.msk.bf16.vlgmr.msrb.gmra.mxu1 %vm203_vm6, %v289_v26 }
 0x40a   :  { %v380_v27 = vpop.xlane.xlu2 %379 }
 0x40b   :  { %v381_v29 = vsub.f32 %v377_v14, %v380_v27 }
 0x40d   :  { %v382_v30 = vmul.f32 1.442695, %v381_v29 }
 0x40f   :  { %972 = vpow2.f32 %v382_v30 }
 0x415   :  { %v973_v33 = vpop.eup %972 }
 0x416   :  { %v384_v35 = vsel %vm203_vm6, %v973_v33, 0.0  ;;  %v387_v36 = vpack.c.bf16 %v973_v33, %v973_v33 }
 0x417   :  { %385 = vadd.xlane.f32.xlu2 %v384_v35  ;;  %v484_v61 = vpop.permute.xlu1 %483 }
 0x418   :  { %895 = vmatmul.msk.bf16.vlgmr.msrb.gmra.mxu3 %vm203_vm6, %v387_v36  ;;  %v486_v63 = vadd.f32 %v484_v61, %v480_v62 }
 0x419   :  { %624 = vmatpush.bf16.msrb.mxu3 %v1289_v28 }
 0x41a   :  { %v487_v2 = vpack.c.bf16 %v486_v63, %v486_v63  ;;  %v591_v63 = vld [vmem:[%s1463_s7 + $0x8] sm:$0xf] }
 0x428   :  { %899 = vmatmul.msk.bf16.vlgmr.msra.gmra.mxu3 %vm203_vm6, %v489_v20 }
 0x438   :  { %903 = vmatmul.msk.bf16.vlgmr.msrb.gmra.mxu3 %vm203_vm6, %v613_v37 }
 0x46d   :  { %v1367_v38 = vpop.f32.mrf.mxu1 }
 0x475   :  { %v309_v39 = vpop.f32.mrf.mxu1 }
 0x48a   :  { %v386_v43 = vpop.xlane.xlu2 %385 }
 0x48b   :  { %974 = vrcp.f32 %v386_v43  ;;  %v415_v46 = vand.u32 2147483648, %v386_v43  ;;  %v413_v48 = vand.u32 2147483647, %v386_v43  ;;  %vm409_vm9 = vweird.f32 %v386_v43 }
 0x48d   :  { %v416_v50 = vor.u32 1.1754944e-38, %v415_v46  ;;  %vm414_vm11 = vcmp.eq.f32.partialorder %v413_v48, 8.507059e+37 }
 0x491   :  { %v975_v44 = vpop.eup %974 }
 0x492   :  { %v405_v45 = vmul.f32 %v975_v44, %v386_v43  ;;  %vm410_vm8 = vweird.f32 %v975_v44 }
 0x493   :  { %vm411_vm10 = vmor %vm409_vm9, %vm410_vm8 }
 0x494   :  { %v406_v28 = vsub.f32 1.0, %v405_v45 }
 0x496   :  { %v407_v47 = vmul.f32 %v975_v44, %v406_v28 }
 0x498   :  { %v408_v49 = vadd.f32 %v975_v44, %v407_v47 }
 0x49a   :  { %v412_v51 = vsel %vm411_vm10, %v975_v44, %v408_v49 }
 0x49b   :  { %v400_v52 = vpop.f32.mrf.mxu3  ;;  %v417_v53 = vsel %vm414_vm11, %v416_v50, %v412_v51 }
 0x49c   :  { %v418_v54 = vmul.f32 %v417_v53, %v400_v52 }
 0x49e   :  { %v419_v55 = vpack.c.bf16 %v418_v54, %v418_v54 }
 0x4a0   :  { %896 = vmatmul.msk.bf16.vlgmr.msra.gmra.mxu1 %vm203_vm6, %v419_v55 }
 0x4a3   :  { %v402_v56 = vpop.f32.mrf.mxu3 }
 0x4ab   :  { %v502_v57 = vpop.f32.mrf.mxu3 }
 0x4ac   :  { %v510_v58 = vmul.f32 %v502_v57, %v1317_v41 }
 0x4ae   :  { %512 = vrot.lane.b32.xlu1 %v510_v58, %s1186_s5 }
 0x4b3   :  { %v504_v60 = vpop.f32.mrf.mxu3 }
 0x4b6   :  { %630 = vrot.lane.b32.xlu1 %v1306_v34, %s1187_s17 }
 0x4bb   :  { %v626_v0 = vpop.f32.mrf.mxu3 }
 0x4bc   :  { %v634_v3 = vmul.f32 %v626_v0, %v1317_v41  ;;  %v596_v0 = vsel %vm207_vm5, %v591_v63, 0 }
 0x4bd   :  { %605 = vmatpush.bf16.msrb.mxu0 %v596_v0 }
 0x4be   :  { %636 = vrot.lane.b32.xlu2 %v634_v3, %s1187_s17  ;;  %521 = vrot.lane.b32.xlu1 %v487_v2, %s1184_s13  ;;  %v704_v2 = vld [vmem:[%s1463_s7 + $0xc] sm:$0xf]  ;;  %s867_s13 = sshll.u32 %s1467_s11, 4  ;;  %s868_s13 = int_to_ptr.hbm [resolvable:$true] %s867_s13 }
 0x4bf   :  { %v709_v3 = vsel %vm207_vm5, %v704_v2, 0 }
 0x4c1   :  { %718 = vmatpush.bf16.msra.mxu0 %v709_v3 }
 0x4c3   :  { %v628_v6 = vpop.f32.mrf.mxu3 }
 0x518   :  { %v637_v15 = vpop.permute.xlu2 %636 }
 0x51d   :  { %v1380_v7 = vpop.f32.mrf.mxu1 }
 0x520   :  { %v513_v9 = vpop.permute.xlu1 %512 }
 0x521   :  { %v515_v10 = vadd.f32 %v513_v9, %v509_v8 }
 0x523   :  { %v516_v11 = vpack.c.bf16 %v515_v10, %v515_v10 }
 0x525   :  { %v438_v13 = vpop.f32.mrf.mxu1  ;;  %518 = vrot.lane.b32.xlu1 %v516_v11, %s1181_s3 }
 0x528   :  { %v631_v34 = vpop.permute.xlu1 %630 }
 0x529   :  { %v633_v14 = vmul.f32 %v631_v34, %v1294_v31  ;;  %v327_v31 = vld [vmem:[%s1463_s7] sm:$0xf] }
 0x52a   :  { %v444_v20 = vsel %vm207_vm5, %v327_v31, 0 }
 0x52b   :  { %v639_v16 = vadd.f32 %v637_v15, %v633_v14  ;;  %453 = vmatpush.bf16.msra.mxu2 %v444_v20 }
 0x52d   :  { %v640_v41 = vpack.c.bf16 %v639_v16, %v639_v16 }
 0x52f   :  { %642 = vrot.lane.b32.xlu0 %v640_v41, %s1185_s14 }
 0x530   :  { %v522_v17 = vpop.permute.xlu1 %521 }
 0x531   :  { %v527_v18 = vsel %vm203_vm6, %v522_v17, 0 }
 0x532   :  { %536 = vmatpush.bf16.xpose.msrb.mxu1 %v527_v18 }
 0x537   :  { %554 = vrot.lane.b32.xlu0 %v1298_v32, %s1188_s18 }
 0x53a   :  { %654 = vmatpush.bf16.xpose.msra.mxu1 %v527_v18 }
 0x54f   :  { %287 = vadd.xlane.f32.xlu1 %v286_v19 }
 0x597   :  { %v519_v21 = vpop.permute.xlu1 %518 }
 0x598   :  { %900 = vmatmul.msk.bf16.vlgmr.msrb.gmra.mxu1 %vm203_vm6, %v519_v21 }
 0x5a1   :  { %v643_v22 = vpop.permute.xlu0 %642 }
 0x5a8   :  { %904 = vmatmul.msk.bf16.vlgmr.msra.gmra.mxu1 %vm203_vm6, %v643_v22 }
 0x5a9   :  { %v555_v23 = vpop.permute.xlu0 %554 }
 0x5aa   :  { %v560_v32 = vsel %vm207_vm5, %v555_v23, 0 }
 0x5ab   :  { %569 = vmatpush.bf16.msrb.mxu2 %v560_v32 }
 0x5c2   :  { %v288_v24 = vpop.xlane.xlu1 %287 }
 0x5c3   :  { %976 = vrcp.f32 %v288_v24  ;;  %v322_v29 = vand.u32 2147483648, %v288_v24  ;;  %v320_v33 = vand.u32 2147483647, %v288_v24  ;;  %vm316_vm13 = vweird.f32 %v288_v24 }
 0x5c5   :  { %v323_v36 = vor.u32 1.1754944e-38, %v322_v29  ;;  %vm321_vm15 = vcmp.eq.f32.partialorder %v320_v33, 8.507059e+37 }
 0x5c9   :  { %v977_v25 = vpop.eup %976 }
 0x5ca   :  { %v312_v26 = vmul.f32 %v977_v25, %v288_v24  ;;  %vm317_vm12 = vweird.f32 %v977_v25 }
 0x5cb   :  { %vm318_vm14 = vmor %vm316_vm13, %vm317_vm12 }
 0x5cc   :  { %v313_v27 = vsub.f32 1.0, %v312_v26 }
 0x5ce   :  { %v314_v30 = vmul.f32 %v977_v25, %v313_v27 }
 0x5d0   :  { %v315_v35 = vadd.f32 %v977_v25, %v314_v30 }
 0x5d2   :  { %v319_v37 = vsel %vm318_vm14, %v977_v25, %v315_v35 }
 0x5d3   :  { %v324_v39 = vsel %vm321_vm15, %v323_v36, %v319_v37  ;;  %vm839_vm15 = vcmask 523264  }
 0x5d4   :  { %v325_v40 = vmul.f32 %v324_v39, %v1367_v38 }
 0x5d6   :  { %v326_v42 = vpack.c.bf16 %v325_v40, %v325_v40 }
 0x5d8   :  { %897 = vmatmul.msk.bf16.vlgmr.msra.gmra.mxu2 %vm203_vm6, %v326_v42 }
 0x5d9   :  { %682 = vmatpush.bf16.msra.mxu2 %v560_v32 }
 0x615   :  { %v538_v43 = vpop.f32.mrf.mxu1 }
 0x616   :  { %v542_v44 = vmul.f32 0.35355338, %v538_v43 }
 0x618   :  { %v543_v45 = vsel %vm198_vm7, %v542_v44, -1e+30 }
 0x619   :  { %v544_v28 = vsel %vm203_vm6, %v543_v45, -inf }
 0x61a   :  { %545 = vmax.xlane.f32.xlu2 %v544_v28 }
 0x61d   :  { %v540_v46 = vpop.f32.mrf.mxu1 }
 0x625   :  { %v656_v47 = vpop.f32.mrf.mxu1 }
 0x626   :  { %v660_v48 = vmul.f32 0.35355338, %v656_v47 }
 0x628   :  { %v661_v38 = vsel %vm198_vm7, %v660_v48, -1e+30 }
 0x629   :  { %v662_v49 = vsel %vm203_vm6, %v661_v38, -inf }
 0x62a   :  { %663 = vmax.xlane.f32.xlu0 %v662_v49 }
 0x62d   :  { %v658_v50 = vpop.f32.mrf.mxu1 }
 0x65b   :  { %v1407_v51 = vpop.f32.mrf.mxu2 }
 0x65c   :  { %v456_v42 = vadd.f32 %v1407_v51, %v1380_v7  ;;  %v936_v7 = vld [vmem:[%s1465_s9] sm:$0xff] }
 0x663   :  { %v457_v52 = vpop.f32.mrf.mxu2 }
 0x68d   :  { %v546_v53 = vpop.xlane.xlu2 %545 }
 0x68e   :  { %v547_v54 = vsub.f32 %v543_v45, %v546_v53 }
 0x690   :  { %v548_v55 = vmul.f32 1.442695, %v547_v54 }
 0x692   :  { %978 = vpow2.f32 %v548_v55 }
 0x698   :  { %v979_v56 = vpop.eup %978 }
 0x699   :  { %v553_v57 = vpack.c.bf16 %v979_v56, %v979_v56  ;;  %v550_v58 = vsel %vm203_vm6, %v979_v56, 0.0 }
 0x69a   :  { %551 = vadd.xlane.f32.xlu1 %v550_v58 }
 0x69b   :  { %901 = vmatmul.msk.bf16.vlgmr.msrb.gmra.mxu2 %vm203_vm6, %v553_v57  ;;  %v965_v57 = vld [vmem:[#allocation11] ss:$0 sm:$0xff] }
 0x69d   :  { %v664_v4 = vpop.xlane.xlu0 %663 }
 0x69e   :  { %v665_v5 = vsub.f32 %v661_v38, %v664_v4  ;;  %v937_v38 = vld [vmem:[%s1465_s9 + $0x8] sm:$0xff] }
 0x69f   :  { %774 = vmatpush.bf16.msra.mxu3 %v937_v38 }
 0x6a0   :  { %v666_v59 = vmul.f32 1.442695, %v665_v5 }
 0x6a2   :  { %980 = vpow2.f32 %v666_v59 }
 0x6a3   :  { %775 = vmatpush.bf16.msra.mxu3 %v936_v7 }
 0x6a8   :  { %v981_v60 = vpop.eup %980 }
 0x6a9   :  { %v671_v61 = vpack.c.bf16 %v981_v60, %v981_v60  ;;  %v668_v62 = vsel %vm203_vm6, %v981_v60, 0.0  ;;  %v940_v60 = vld [vmem:[%s1466_s10 + $0x10] sm:$0xff] }
 0x6aa   :  { %669 = vadd.xlane.f32.xlu2 %v668_v62 }
 0x6ab   :  { %905 = vmatmul.msk.bf16.vlgmr.msra.gmra.mxu2 %vm203_vm6, %v671_v61  ;;  %v939_v61 = vld [vmem:[%s1466_s10 + $0x8] sm:$0xff] }
 0x70d   :  { %v552_v6 = vpop.xlane.xlu1 %551 }
 0x70e   :  { %982 = vrcp.f32 %v552_v6  ;;  %v586_v11 = vand.u32 2147483648, %v552_v6  ;;  %v584_v34 = vand.u32 2147483647, %v552_v6  ;;  %vm580_vm2 = vweird.f32 %v552_v6 }
 0x710   :  { %v587_v15 = vor.u32 1.1754944e-38, %v586_v11  ;;  %vm585_vm4 = vcmp.eq.f32.partialorder %v584_v34, 8.507059e+37 }
 0x714   :  { %v983_v8 = vpop.eup %982 }
 0x715   :  { %v576_v9 = vmul.f32 %v983_v8, %v552_v6  ;;  %vm581_vm1 = vweird.f32 %v983_v8  ;;  %v938_v6 = vld [vmem:[%s1466_s10] sm:$0xff] }
 0x716   :  { %vm582_vm3 = vmor %vm580_vm2, %vm581_vm1  ;;  %vm858_vm1 = vcmask 257024  }
 0x717   :  { %v577_v10 = vsub.f32 1.0, %v576_v9 }
 0x719   :  { %v578_v13 = vmul.f32 %v983_v8, %v577_v10 }
 0x71b   :  { %v579_v14 = vadd.f32 %v983_v8, %v578_v13 }
 0x71d   :  { %v670_v16 = vpop.xlane.xlu2 %669  ;;  %v583_v41 = vsel %vm582_vm3, %v983_v8, %v579_v14 }
 0x71e   :  { %984 = vrcp.f32 %v670_v16  ;;  %v571_v17 = vpop.f32.mrf.mxu2  ;;  %v588_v18 = vsel %vm585_vm4, %v587_v15, %v583_v41  ;;  %v699_v32 = vand.u32 2147483648, %v670_v16  ;;  %v697_v25 = vand.u32 2147483647, %v670_v16 }
 0x71f   :  { %v589_v19 = vmul.f32 %v588_v18, %v571_v17  ;;  %vm693_vm7 = vweird.f32 %v670_v16 }
 0x720   :  { %v700_v27 = vor.u32 1.1754944e-38, %v699_v32  ;;  %vm698_vm9 = vcmp.eq.f32.partialorder %v697_v25, 8.507059e+37 }
 0x721   :  { %v590_v31 = vpack.c.bf16 %v589_v19, %v589_v19 }
 0x723   :  { %902 = vmatmul.msk.bf16.vlgmr.msrb.gmra.mxu0 %vm203_vm6, %v590_v31 }
 0x724   :  { %v985_v20 = vpop.eup %984 }
 0x725   :  { %v689_v21 = vmul.f32 %v985_v20, %v670_v16  ;;  %vm694_vm5 = vweird.f32 %v985_v20 }
 0x726   :  { %v573_v22 = vpop.f32.mrf.mxu2  ;;  %vm695_vm8 = vmor %vm693_vm7, %vm694_vm5 }
 0x727   :  { %v690_v23 = vsub.f32 1.0, %v689_v21 }
 0x729   :  { %v691_v24 = vmul.f32 %v985_v20, %v690_v23 }
 0x72b   :  { %v692_v26 = vadd.f32 %v985_v20, %v691_v24 }
 0x72d   :  { %v696_v29 = vsel %vm695_vm8, %v985_v20, %v692_v26 }
 0x72e   :  { %v684_v30 = vpop.f32.mrf.mxu2  ;;  %v701_v33 = vsel %vm698_vm9, %v700_v27, %v696_v29 }
 0x72f   :  { %v702_v35 = vmul.f32 %v701_v33, %v684_v30 }
 0x731   :  { %v703_v36 = vpack.c.bf16 %v702_v35, %v702_v35 }
 0x733   :  { %906 = vmatmul.msk.bf16.vlgmr.msra.gmra.mxu0 %vm203_vm6, %v703_v36 }
 0x736   :  { %v686_v37 = vpop.f32.mrf.mxu2 }
 0x7a0   :  { %v607_v39 = vpop.f32.mrf.mxu0 }
 0x7a1   :  { %v611_v43 = vadd.f32 %v607_v39, %v456_v42 }
 0x7a8   :  { %v609_v40 = vpop.f32.mrf.mxu0 }
 0x7b0   :  { %v720_v44 = vpop.f32.mrf.mxu0 }
 0x7b1   :  { %v724_v45 = vadd.f32 %v720_v44, %v611_v43 }
 0x7b3   :  { %v1426_v28 = vadd.f32 %v724_v45, %v1269_v1 }
 0x7b5   :  { %v726_v46 = vmul.f32 %v1426_v28, %v1426_v28 }
 0x7b7   :  { %v727_v47 = vsel %vm125_vm0, %v726_v46, 0.0 }
 0x7b8   :  { %v722_v48 = vpop.f32.mrf.mxu0  ;;  %728 = vadd.xlane.f32.xlu1 %v727_v47 }
 0x82b   :  { %v729_v49 = vpop.xlane.xlu1 %728 }
 0x82c   :  { %v730_v1 = vmul.f32 %v729_v49, %v1280_v12  ;;  %v941_v12 = vld [vmem:[%s1466_s10 + $0x18] sm:$0xff]  ;;  %s1190_s10 = smov [#allocation13]  }
 0x82d   :  { %847 = vmatpush.bf16.msrb.mxu1 %v941_v12  ;;  %s865_s3 = sshll.u32 %s1190_s10, 4  ;;  %s866_s3 = int_to_ptr.vmem [resolvable:$true] %s865_s3 }
 0x82e   :  { %v731_v50 = vadd.f32 1e-05, %v730_v1 }
 0x830   :  { %986 = vrsqrt.f32 %v731_v50  ;;  %vm738_vm10 = vweird.f32 %v731_v50 }
 0x831   :  { %848 = vmatpush.bf16.msrb.mxu1 %v940_v60 }
 0x835   :  { %849 = vmatpush.bf16.msrb.mxu1 %v939_v61 }
 0x836   :  { %v987_v51 = vpop.eup %986 }
 0x837   :  { %v733_v52 = vmul.f32 %v987_v51, %v731_v50  ;;  %vm739_vm6 = vweird.f32 %v987_v51 }
 0x838   :  { %vm740_vm11 = vmor %vm738_vm10, %vm739_vm6 }
 0x839   :  { %v734_v53 = vmul.f32 %v987_v51, %v733_v52  ;;  %850 = vmatpush.bf16.msrb.mxu1 %v938_v6 }
 0x83b   :  { %v735_v54 = vmul.f32 0.5, %v734_v53 }
 0x83d   :  { %v736_v55 = vsub.f32 1.5, %v735_v54 }
 0x83f   :  { %v737_v56 = vmul.f32 %v987_v51, %v736_v55 }
 0x841   :  { %v741_v58 = vsel %vm740_vm11, %v987_v51, %v737_v56 }
 0x842   :  { %v742_v4 = vmul.f32 %v741_v58, %v1426_v28 }
 0x844   :  { %v747_v5 = vmul.f32 %v965_v57, %v742_v4 }
 0x846   :  { %v748_v59 = vpack.c.bf16 %v747_v5, %v747_v5 }
 0x848   :  { %915 = vmatmul.msk.bf16.vlgmr.msra.gmra.mxu3 %vm125_vm0, %v748_v59 }
 0x8cb   :  { %v777_v62 = vpop.f32.mrf.mxu3 }
 0x8cc   :  { %802 = vrot.lane.b32.xlu2 %v777_v62, %s1189_s27  ;;  %v916_v0 = vmul.f32 -1.442695, %v777_v62 }
 0x8ce   :  { %988 = vpow2.f32 %v916_v0 }
 0x8d3   :  { %v779_v63 = vpop.f32.mrf.mxu3 }
 0x8d4   :  { %v989_v2 = vpop.eup %988 }
 0x8d5   :  { %v784_v3 = vadd.f32 1.0, %v989_v2 }
 0x8d7   :  { %990 = vrcp.f32 %v784_v3  ;;  %v796_v34 = vand.u32 2147483648, %v784_v3  ;;  %vm790_vm12 = vweird.f32 %v784_v3  ;;  %v794_v14 = vand.u32 2147483647, %v784_v3 }
 0x8d9   :  { %v797_v16 = vor.u32 1.1754944e-38, %v796_v34  ;;  %vm795_vm14 = vcmp.eq.f32.partialorder %v794_v14, 8.507059e+37 }
 0x8dd   :  { %v991_v8 = vpop.eup %990 }
 0x8de   :  { %v786_v9 = vmul.f32 %v991_v8, %v784_v3  ;;  %vm791_vm0 = vweird.f32 %v991_v8 }
 0x8df   :  { %vm792_vm13 = vmor %vm790_vm12, %vm791_vm0 }
 0x8e0   :  { %v787_v10 = vsub.f32 1.0, %v786_v9 }
 0x8e2   :  { %v788_v11 = vmul.f32 %v991_v8, %v787_v10 }
 0x8e4   :  { %v789_v13 = vadd.f32 %v991_v8, %v788_v11 }
 0x8e6   :  { %v793_v15 = vsel %vm792_vm13, %v991_v8, %v789_v13 }
 0x8e7   :  { %v798_v41 = vsel %vm795_vm14, %v797_v16, %v793_v15 }
 0x8e8   :  { %v800_v17 = vmul.f32 %v798_v41, %v777_v62 }
 0x926   :  { %v803_v18 = vpop.permute.xlu2 %802 }
 0x927   :  { %v805_v19 = vmul.f32 %v803_v18, %v800_v17 }
 0x929   :  { %v806_v31 = vpack.c.bf16 %v805_v19, %v805_v19 }
 0x92b   :  { %933 = vmatmul.msk.bf16.vlgmr.msrb.gmra.mxu1 %vm839_vm15, %v806_v31 }
 0x9a8   :  { %v852_v20 = vpop.f32.mrf.mxu1 }
 0x9a9   :  { %v856_v21 = vadd.f32 %v852_v20, %v1426_v28 }
 0x9ab   :  { %v857_v22 = vpack.c.bf16 %v856_v21, %v856_v21 }
 0x9ad   :  { %859 = vst.msk [vmem:[#allocation13] sm:$0xf] %vm858_vm1, %v857_v22 }
 0x9ae   :  { %870 = dma.vmem_to_hbm [thread:$0]  %s866_s3, 64, %s868_s13, [#allocation4]  }
 0x9b0   :  { %v854_v23 = vpop.f32.mrf.mxu1 }
 0x9b1   :  { %1168 = dma.done.wait [#allocation4], 64  }
 0x9b2   :  { %1169 = vsyncadd [#allocation4], 4294967232 }
 0x9b3   :  { %875 = vsyncpa [#allocation3], 1 }
 0x9b4   :  { %876 = vsyncpa [#allocation6], 1 }
 0x9b5   :  { %877 = vsyncpa [#allocation9], 1 }
 0x9b6   :  { %878 = vsyncpa [#allocation12], 1 }
 0x9b7   :  { %879 = vsyncpa [#allocation4], 1 }

</bundles_post_ra>
